<compile_context>
chip_gen: v7x
topology: tpu7x:2x2x1
jax: 0.10.0
libtpu: 0.0.40
codegen_flags: <defaults>
</compile_context>

<pallas_src>
import functools

import jax
import jax.numpy as jnp
from jax import lax
from jax.experimental import pallas as pl
from jax.experimental.pallas import tpu as pltpu


# ----------------------------------------------------------------------------
# One-time pltpu.roll sign-convention probe (run eagerly, outside jit).
# ----------------------------------------------------------------------------

def _roll_matches_jnp():
    """True iff pltpu.roll(x, s, axis) == jnp.roll(x, s, axis)."""
    xprobe = jnp.tile(jnp.arange(128, dtype=jnp.int32)[None, :], (8, 1))

    def k(x_ref, o_ref):
        o_ref[...] = pltpu.roll(x_ref[...], 1, axis=1)

    y = pl.pallas_call(
        k,
        out_shape=jax.ShapeDtypeStruct((8, 128), jnp.int32),
        grid=(1,),
        in_specs=[pl.BlockSpec((8, 128), lambda i: (0, 0))],
        out_specs=pl.BlockSpec((8, 128), lambda i: (0, 0)),
    )(xprobe)
    return bool(int(y[0, 0]) == 127)   # jnp.roll puts x[-1] at index 0


# ----------------------------------------------------------------------------
# Fused hourglass-level kernel: res-stack + maxpool + low-stack (+ extra)
# ----------------------------------------------------------------------------

def level_kernel(x_ref, sel_ref,
                 s1_ref, b1_ref, w1_ref, bf1_ref,
                 w2_ref, bf2_ref, w3_ref, c3b_ref,
                 res_ref, low_ref,
                 *, img_h, img_w, nb, has_extra, roll_jnp):
    f32 = jnp.float32
    bf16 = jnp.bfloat16
    cch, lanes = x_ref.shape                 # (C, N*h*w)
    pin = w1_ref.shape[1]
    h, w = img_h, img_w
    hl, wl = h // 2, w // 2
    lanes_lo = lanes // 4

    def shift_lanes(v, s, length):
        # t[..., i] = v[..., (i + s) mod length]  (s static Python int).
        if s % length == 0:
            return v
        amount = (-s) % length if roll_jnp else s % length
        return pltpu.roll(v, amount, axis=1)

    def edge_masks(hh, ww, rows, length):
        # Per-image top/bottom/left/right edge masks on the flattened
        # (batch, y, x) lane axis.  They also mask cross-image bleed of the
        # circular shifts (image boundaries coincide with row edges).
        idx = lax.broadcasted_iota(jnp.int32, (rows, length), 1)
        im = idx % (hh * ww)
        row = im // ww
        col = im % ww
        return (row == 0, row == hh - 1, col == 0, col == ww - 1)

    # Hoisted: masks are loop-invariant across all blocks of a stack.
    mk_hi = edge_masks(h, w, pin, lanes)          # full-res 3x3 convs
    mk_pool = edge_masks(h, w, cch, lanes)        # maxpool on level input
    mk_lo = edge_masks(hl, wl, pin, lanes_lo)     # low-res 3x3 convs

    def conv_taps(a2, hh, ww, length, masks):
        # Build the 9 shifted taps with XLU rolls + edge zeroing, stacked on
        # sublanes, so the whole 3x3 conv is one (P, 9P) @ (9P, L) MXU dot.
        top, bot, left, right = masks
        taps = []
        for ky in range(3):
            for kx in range(3):
                s = (ky - 1) * ww + (kx - 1)
                t = shift_lanes(a2, s, length)
                m = None
                if ky == 0:
                    m = top
                elif ky == 2:
                    m = bot
                if kx == 0:
                    m = left if m is None else m | left
                elif kx == 2:
                    m = right if m is None else m | right
                if m is not None:
                    t = jnp.where(m, 0.0, t)
                taps.append(t)
        return jnp.concatenate(taps, axis=0)       # (9P, L)

    def bottleneck(v, b, hh, ww, length, masks):
        # Pre-activation bottleneck; conv biases + trailing BN affines are
        # folded into the bf16 weights host-side.
        a1 = jnp.maximum(v * s1_ref[b] + b1_ref[b], 0.0)              # (C, L)
        y1 = jnp.dot(w1_ref[b], a1.astype(bf16),
                     preferred_element_type=f32) + bf1_ref[b]
        a2 = jnp.maximum(y1, 0.0)                                      # (P, L)
        taps = conv_taps(a2, hh, ww, length, masks)
        y2 = jnp.dot(w2_ref[b], taps.astype(bf16),
                     preferred_element_type=f32) + bf2_ref[b]
        a3 = jnp.maximum(y2, 0.0)                                      # (P, L)
        y3 = jnp.dot(w3_ref[b], a3.astype(bf16),
                     preferred_element_type=f32) + c3b_ref[b]
        return v + y3                                                  # (C, L)

    x = x_ref[...]

    # --- residual (same-resolution) stack ------------------------------------
    res = x
    for b in range(nb):
        res = bottleneck(res, b, h, w, lanes, mk_hi)
    res_ref[...] = res.astype(res_ref.dtype)

    # --- max_pool2d(k=3, s=2, p=1), fully in VMEM -----------------------------
    top, bot, left, right = mk_pool
    xl = jnp.where(left, -jnp.inf, shift_lanes(x, -1, lanes))    # x[.., i-1]
    xr = jnp.where(right, -jnp.inf, shift_lanes(x, 1, lanes))    # x[.., i+1]
    mcol = jnp.maximum(jnp.maximum(xl, xr), x)
    mup = jnp.where(top, -jnp.inf, shift_lanes(mcol, -w, lanes))
    mdn = jnp.where(bot, -jnp.inf, shift_lanes(mcol, w, lanes))
    mfull = jnp.maximum(jnp.maximum(mup, mdn), mcol)             # (C, L)
    # Even-row / even-col downsample as an exact 0/1-selection matmul.
    # TODO(synk): at production HW replace with strided ref reads (O(HW^2)).
    low = jnp.dot(mfull, sel_ref[...], preferred_element_type=f32)   # (C, L/4)

    # --- low-resolution stack(s) ----------------------------------------------
    for b in range(nb, 2 * nb):
        low = bottleneck(low, b, hl, wl, lanes_lo, mk_lo)
    if has_extra:
        for b in range(2 * nb, 3 * nb):
            low = bottleneck(low, b, hl, wl, lanes_lo, mk_lo)
    low_ref[...] = low.astype(low_ref.dtype)


def call_level(x_cl, lp, sel, h, w, nb, has_extra, roll_jnp):
    c, lanes = x_cl.shape
    lanes_lo = lanes // 4
    n_blocks = lp["w1t"].shape[0]
    assert h % 2 == 0 and w % 2 == 0
    assert lanes % (h * w) == 0
    assert sel.shape == (lanes, lanes_lo)
    assert n_blocks == (3 if has_extra else 2) * nb
    # pltpu.roll-based taps want lane extents that are multiples of 128;
    # the batch is folded onto lanes to guarantee this at the deeper levels.
    assert lanes % 128 == 0 and lanes_lo % 128 == 0, (lanes, lanes_lo)

    kern = functools.partial(level_kernel, img_h=h, img_w=w, nb=nb,
                             has_extra=has_extra, roll_jnp=roll_jnp)

    def rep(shape):
        zeros = (0,) * len(shape)
        return pl.BlockSpec(shape, lambda i, _z=zeros: _z)

    res, low = pl.pallas_call(
        kern,
        out_shape=(jax.ShapeDtypeStruct((c, lanes), jnp.float32),
                   jax.ShapeDtypeStruct((c, lanes_lo), jnp.float32)),
        grid_spec=pltpu.PrefetchScalarGridSpec(
            num_scalar_prefetch=0,
            grid=(1,),
            in_specs=[
                rep((c, lanes)),                  # x  (C, N*h*w)
                rep(sel.shape),                   # pooling selection matrix
                rep(lp["s1"].shape), rep(lp["b1"].shape),
                rep(lp["w1t"].shape), rep(lp["bf1"].shape),
                rep(lp["w2t"].shape), rep(lp["bf2"].shape),
                rep(lp["w3t"].shape), rep(lp["c3b"].shape),
            ],
            out_specs=(rep((c, lanes)), rep((c, lanes_lo))),
        ),
        compiler_params=pltpu.CompilerParams(
            dimension_semantics=("arbitrary",),
            vmem_limit_bytes=32 * 1024 * 1024,
        ),
    )(x_cl, sel, lp["s1"], lp["b1"], lp["w1t"], lp["bf1"],
      lp["w2t"], lp["bf2"], lp["w3t"], lp["c3b"])
    return res, low


# ----------------------------------------------------------------------------
# Host-side parameter folding / packing and pooling-selection matrices
# ----------------------------------------------------------------------------

def fold_block(p):
    f32 = jnp.float32
    pin = p["w1"].shape[1]
    w1t = (p["w1"] * p["s2"][None, :]).T.astype(jnp.bfloat16)          # (P, C)
    bf1 = (p["c1b"] * p["s2"] + p["b2"]).astype(f32)[:, None]          # (P, 1)
    w2t = (jnp.transpose(p["w2"], (2, 0, 1)).reshape(pin, 9 * pin)
           * p["s3"][:, None]).astype(jnp.bfloat16)                    # (P, 9P)
    bf2 = (p["c2b"] * p["s3"] + p["b3"]).astype(f32)[:, None]          # (P, 1)
    w3t = p["w3"].T.astype(jnp.bfloat16)                               # (C, P)
    return dict(s1=p["s1"].astype(f32)[:, None],
                b1=p["b1"].astype(f32)[:, None],
                w1t=w1t, bf1=bf1, w2t=w2t, bf2=bf2, w3t=w3t,
                c3b=p["c3b"].astype(f32)[:, None])


def pack_level(raw_hg, i):
    blocks = list(raw_hg[i][0]) + list(raw_hg[i][1])
    if i == 0:
        blocks = blocks + list(raw_hg[0][2])
    folded = [fold_block(b) for b in blocks]
    return {k: jnp.stack([f[k] for f in folded], axis=0) for k in folded[0]}


def make_pool_select(n, h, w):
    ho, wo = h // 2, w // 2
    hw, hwo = h * w, ho * wo
    dst = jnp.arange(n * hwo)
    img, r = dst // hwo, dst % hwo
    oy, ox = r // wo, r % wo
    src = img * hw + (2 * oy) * w + 2 * ox
    return (jnp.arange(n * hw)[:, None] == src[None, :]).astype(jnp.float32)


# ----------------------------------------------------------------------------
# Encoder forward (XLA level: only layout reshapes/transposes between kernels)
# ----------------------------------------------------------------------------

def hourglass_encoder_forward(packed, x_nchw, depth, num_blocks, roll_jnp):
    n, c, h, w = x_nchw.shape
    # NCHW -> channels on sublanes, flattened (batch, y, x) on lanes.
    x = jnp.transpose(x_nchw, (1, 0, 2, 3)).reshape(c, n * h * w)
    feats = []
    cur_h, cur_w = h, w
    for lvl in range(depth - 1, 0, -1):        # == reversed(range(1, depth))
        res, x = call_level(x, packed["levels"][lvl - 1],
                            packed["sel"][lvl - 1], cur_h, cur_w, num_blocks,
                            has_extra=(lvl == 1), roll_jnp=roll_jnp)
        feats.append((res, cur_h, cur_w))
        cur_h, cur_w = cur_h // 2, cur_w // 2
    feats = feats[::-1]

    def to_nchw(t, hh, ww):
        return t.reshape(c, n, hh, ww).transpose(1, 0, 2, 3)

    out_x = to_nchw(x, cur_h, cur_w)
    outs = [to_nchw(r, hh, ww) for (r, hh, ww) in feats]
    return out_x, outs


# ----------------------------------------------------------------------------
# Pure-JAX (XLA) reference for validation
# ----------------------------------------------------------------------------

def reference_forward(raw_hg, x_nchw, depth):
    hp = lax.Precision.HIGHEST

    def block(p, x):  # x: (N, H, W, C)
        pin = p["w1"].shape[1]
        a1 = jnp.maximum(x * p["s1"] + p["b1"], 0.0)
        y1 = jnp.einsum("nhwc,cp->nhwp", a1, p["w1"], precision=hp) + p["c1b"]
        a2 = jnp.maximum(y1 * p["s2"] + p["b2"], 0.0)
        wconv = p["w2"].reshape(3, 3, pin, pin)
        y2 = lax.conv_general_dilated(
            a2, wconv, (1, 1), ((1, 1), (1, 1)),
            dimension_numbers=("NHWC", "HWIO", "NHWC"),
            precision=hp) + p["c2b"]
        a3 = jnp.maximum(y2 * p["s3"] + p["b3"], 0.0)
        y3 = jnp.einsum("nhwp,pc->nhwc", a3, p["w3"], precision=hp) + p["c3b"]
        return x + y3

    def stack(blocks, x):
        for p in blocks:
            x = block(p, x)
        return x

    def maxpool(x):
        return lax.reduce_window(x, -jnp.inf, lax.max, (1, 3, 3, 1),
                                 (1, 2, 2, 1),
                                 ((0, 0), (1, 1), (1, 1), (0, 0)))

    x = jnp.transpose(x_nchw, (0, 2, 3, 1))
    feats = []
    for lvl in range(depth - 1, 0, -1):
        res = stack(raw_hg[lvl - 1][0], x)
        feats.append(res)
        low = maxpool(x)
        low = stack(raw_hg[lvl - 1][1], low)
        if lvl == 1:
            low = stack(raw_hg[0][2], low)
        x = low
    feats = feats[::-1]
    out_x = jnp.transpose(x, (0, 3, 1, 2))
    outs = [jnp.transpose(r, (0, 3, 1, 2)) for r in feats]
    return out_x, outs


# ----------------------------------------------------------------------------
# Deterministic parameter init (shapes follow the module's __init__)
# ----------------------------------------------------------------------------

def _init_bn(key, c):
    k1, k2, k3, k4 = jax.random.split(key, 4)
    gamma = jax.random.uniform(k1, (c,), minval=0.5, maxval=1.5)
    beta = 0.1 * jax.random.normal(k2, (c,))
    mean = 0.1 * jax.random.normal(k3, (c,))
    var = jax.random.uniform(k4, (c,), minval=0.5, maxval=1.5)
    s = gamma / jnp.sqrt(var + 1e-5)
    b = beta - mean * s
    return s.astype(jnp.float32), b.astype(jnp.float32)


def _init_bottleneck(key, c, p):
    ks = jax.random.split(key, 9)
    s1, b1 = _init_bn(ks[0], c)
    s2, b2 = _init_bn(ks[3], p)
    s3, b3 = _init_bn(ks[6], p)
    return dict(
        s1=s1, b1=b1,
        w1=(0.1 * jax.random.normal(ks[1], (c, p))).astype(jnp.float32),
        c1b=(0.05 * jax.random.normal(ks[2], (p,))).astype(jnp.float32),
        s2=s2, b2=b2,
        w2=(0.1 * jax.random.normal(ks[4], (9, p, p))).astype(jnp.float32),
        c2b=(0.05 * jax.random.normal(ks[5], (p,))).astype(jnp.float32),
        s3=s3, b3=b3,
        w3=(0.1 * jax.random.normal(ks[7], (p, c))).astype(jnp.float32),
        c3b=(0.05 * jax.random.normal(ks[8], (c,))).astype(jnp.float32),
    )


def init_encoder_params(key, num_blocks, planes, depth, expansion=2):
    c = planes * expansion
    hg = []
    for i in range(depth):
        n_stacks = 3 if i == 0 else 2
        stacks = []
        for _ in range(n_stacks):
            blocks = []
            for _ in range(num_blocks):
                key, sub = jax.random.split(key)
                blocks.append(_init_bottleneck(sub, c, planes))
            stacks.append(blocks)
        hg.append(stacks)
    return hg


# ----------------------------------------------------------------------------
# Main
# ----------------------------------------------------------------------------

if __name__ == "__main__":
    num_blocks, planes, depth, expansion = 1, 8, 3, 2
    N, C, H, W = 2, planes * expansion, 32, 32

    key = jax.random.PRNGKey(0)
    kparam, kx = jax.random.split(key)
    raw = init_encoder_params(kparam, num_blocks, planes, depth, expansion)
    x = jax.random.normal(kx, (N, C, H, W), dtype=jnp.float32)

    # Run the pltpu.roll convention probe eagerly (outside jit).
    roll_jnp = _roll_matches_jnp()

    packed = {
        "levels": [pack_level(raw, i) for i in range(depth - 1)],
        "sel": [make_pool_select(N, H >> (depth - 2 - i), W >> (depth - 2 - i))
                for i in range(depth - 1)],
    }

    fwd = jax.jit(hourglass_encoder_forward, static_argnums=(2, 3, 4))
    out_x, res_feats = fwd(packed, x, depth, num_blocks, roll_jnp)
    jax.block_until_ready((out_x, res_feats))

    # shape checks implied by the PyTorch forward (depth=3)
    assert out_x.shape == (N, C, H // 4, W // 4)
    assert res_feats[0].shape == (N, C, H // 2, W // 2)
    assert res_feats[1].shape == (N, C, H, W)
    assert all(bool(jnp.isfinite(t).all()) for t in [out_x] + res_feats)

    # numerical check against a pure-JAX / XLA reference (f32 HIGHEST)
    ref_out, ref_feats = jax.jit(reference_forward, static_argnums=2)(raw, x, depth)
    assert bool(jnp.allclose(out_x, ref_out, atol=3e-2, rtol=3e-2)), \
        float(jnp.max(jnp.abs(out_x - ref_out)))
    for got, want in zip(res_feats, ref_feats):
        assert bool(jnp.allclose(got, want, atol=3e-2, rtol=3e-2)), \
            float(jnp.max(jnp.abs(got - want)))

    print("KERNEL_OK")
</pallas_src>

<mosaic_0001>
module attributes {stable_mosaic.version = 11 : i64} {
  func.func @k(%arg0: i32, %arg1: memref<8x128xi32, #tpu.memory_space<vmem>>, %arg2: memref<8x128xi32, #tpu.memory_space<vmem>>) attributes {dimension_semantics = [#tpu.dimension_semantics<arbitrary>], iteration_bounds = array<i64: 1>, scalar_prefetch = 0 : i64, scratch_operands = 0 : i64, tpu.core_type = #tpu.core_type<tc>, window_params = [{pipeline_mode = #tpu.pipeline_mode<synchronous>, transform_indices = @transform_0, window_bounds = array<i64: 8, 128>}, {pipeline_mode = #tpu.pipeline_mode<synchronous>, transform_indices = @transform_1, window_bounds = array<i64: 8, 128>}]} {
    %c0 = arith.constant 0 : index
    %c0_0 = arith.constant 0 : index
    %0 = vector.load %arg1[%c0, %c0_0] : memref<8x128xi32, #tpu.memory_space<vmem>>, vector<8x128xi32>
    %c1_i32 = arith.constant 1 : i32
    %1 = tpu.dynamic_rotate %0 by %c1_i32 dim 1 : vector<8x128xi32>, i32 -> vector<8x128xi32>
    %c0_1 = arith.constant 0 : index
    %c0_2 = arith.constant 0 : index
    %2 = vector.load %arg2[%c0_1, %c0_2] : memref<8x128xi32, #tpu.memory_space<vmem>>, vector<8x128xi32>
    tpu.vector_store %arg2[%c0_1, %c0_2], %1 {strides = array<i32>} : memref<8x128xi32, #tpu.memory_space<vmem>>, vector<8x128xi32>,
    return
  }
  func.func @transform_0(%arg0: i32) -> (i32, i32) {
    %c0_i32 = arith.constant 0 : i32
    %c0_i32_0 = arith.constant 0 : i32
    %c0_i32_1 = arith.constant 0 : i32
    return %c0_i32, %c0_i32_0 : i32, i32
  }
  func.func @transform_1(%arg0: i32) -> (i32, i32) {
    %c0_i32 = arith.constant 0 : i32
    %c0_i32_0 = arith.constant 0 : i32
    %c0_i32_1 = arith.constant 0 : i32
    return %c0_i32, %c0_i32_0 : i32, i32
  }
}

</mosaic_0001>

<bundles_post_ra>
// kernel: tpu_custom_call.1
= control target key start
LH: loop header
LB: loop body
LE: loop exit
PB: predicated region body
PF: predicated region fallthrough
CT: control target
= control target key end

     0   :  { %6 = vsyncpa [#allocation3], 0  ;;  %s128_s0 = inlined_call_operand.hbm [shape: s32[8,128], index: 0, kind: input, shape index: {}]   ;;  %s129_s1 = inlined_call_operand.hbm [shape: s32[8,128], index: 1, kind: output, shape index: {}]  }
   0x1   :  { %7 = vsyncpa [#allocation4], 0  ;;  %s91_s6 = smov [#allocation2]   ;;  %s43_s10 = scalar_lea.hbm %s128_s0, 128 }
   0x2   :  { %s14_s7 = sshll.u32 %s91_s6, 4  ;;  %p44_p0 = scmp.ne.s32.totalorder %s128_s0, %s43_s10  ;;  %s15_s7 = int_to_ptr.vmem [resolvable:$true] %s14_s7 }
   0x3   :  { %p47_p1 = scmp.lt.u32.totalorder %s43_s10, %s128_s0 }
   0x5   :  { %p49_p2 = pnand %p47_p1, %p44_p0 }
   0x7   :  { %52 = shalt.err (!%p49_p2)
}
   0x8   :  { %s53_s15 = scalar_lea.vmem %s15_s7, 128  ;;  %p58_p4 = scmp.lt.s32.totalorder %s15_s7, %s15_s7 }
   0x9   :  { %p54_p3 = scmp.ne.s32.totalorder %s15_s7, %s53_s15  ;;  %p59_p5 = scmp.lt.s32.totalorder %s53_s15, %s53_s15 }
   0xb   :  { %p60_p6 = por %p59_p5, %p58_p4 }
   0xd   :  { %p61_p7 = pnand %p60_p6, %p54_p3 }
   0xf   :  { %64 = shalt.err (!%p61_p7)
}
  0x10   :  { %17 = dma.hbm_to_vmem [thread:$0]  %s128_s0, 128, %s15_s7, [#allocation3]  }
  0x11   :  { %87 = dma.done.wait [#allocation3], 128  }
  0x12   :  { %88 = vsyncadd [#allocation3], 4294967168  ;;  %v21_v0 = vld [vmem:[#allocation2] sm:$0xff]  ;;  %s92_s18 = smov 1   ;;  %s93_s19 = smov [#allocation5]  }
  0x13   :  { %22 = vrot.lane.b32.xlu0 %v21_v0, %s92_s18  ;;  %s31_s20 = sshll.u32 %s93_s19, 4  ;;  %s32_s20 = int_to_ptr.vmem [resolvable:$true] %s31_s20 }
  0x14   :  { %s65_s21 = scalar_lea.vmem %s32_s20, 128  ;;  %p70_p9 = scmp.lt.s32.totalorder %s32_s20, %s32_s20 }
  0x15   :  { %p66_p8 = scmp.ne.s32.totalorder %s32_s20, %s65_s21  ;;  %p71_p10 = scmp.lt.s32.totalorder %s65_s21, %s65_s21 }
  0x17   :  { %p72_p11 = por %p71_p10, %p70_p9 }
  0x19   :  { %p73_p12 = pnand %p72_p11, %p66_p8 }
  0x85   :  { %v23_v1 = vpop.permute.xlu0 %22 }
  0x86   :  { %24 = vst [vmem:[#allocation5] sm:$0xff] %v23_v1 }
  0x87   :  { %76 = shalt.err (!%p73_p12)
}
  0x88   :  { %s77_s0 = scalar_lea.hbm %s129_s1, 128 }
  0x89   :  { %p78_p13 = scmp.ne.s32.totalorder %s129_s1, %s77_s0  ;;  %p81_p0 = scmp.lt.u32.totalorder %s77_s0, %s129_s1 }
  0x8b   :  { %p83_p1 = pnand %p81_p0, %p78_p13 }
  0x8d   :  { %86 = shalt.err (!%p83_p1)
}
  0x8e   :  { %34 = dma.vmem_to_hbm [thread:$0]  %s32_s20, 128, %s129_s1, [#allocation4]  }
  0x8f   :  { %89 = dma.done.wait [#allocation4], 128  }
  0x90   :  { %90 = vsyncadd [#allocation4], 4294967168 }
  0x91   :  { %38 = vsyncpa [#allocation3], 1 }
  0x92   :  { %39 = vsyncpa [#allocation4], 1 }

</bundles_post_ra>
